<compile_context>
chip_gen: v7x
topology: tpu7x:2x2x1
jax: 0.10.0
libtpu: 0.0.40
codegen_flags: <defaults>
</compile_context>

<pallas_src>
import jax
import jax.numpy as jnp
from jax.experimental import pallas as pl
from jax.experimental.pallas import tpu as pltpu


def _decoder_block_kernel(x_ref, t1_ref, b1_ref, t2_ref, b2_ref, out_ref,
                          xp_ref, hp_ref):
    """Fused conv3x3+bias+relu -> conv3x3+bias+residual+relu for one batch element.

    x_ref   : (1, H, W*Cin)            input rows (lane-dense W*C layout)
    t1_ref  : (3, W*Cin, W*Cmid)       conv1 block-Toeplitz weights (BN1 scale folded)
    b1_ref  : (1, W*Cmid)              folded BN1 bias, tiled over W
    t2_ref  : (3, W*Cmid, W*Cout)      conv2 block-Toeplitz weights (BN2 scale folded)
    b2_ref  : (1, W*Cout)              folded BN2 bias, tiled over W
    out_ref : (1, H, W*Cout)
    xp_ref  : VMEM scratch (H+2, W*Cin)   H-padded input rows
    hp_ref  : VMEM scratch (H+2, W*Cmid)  H-padded intermediate (never leaves VMEM)
    """
    H = out_ref.shape[1]
    wcin = x_ref.shape[2]
    wcmid = hp_ref.shape[1]

    def conv_rows(src_ref, t_ref):
        # out[y] = sum_dy padded_rows[y+dy] @ T[dy]  -- three MXU matmuls, f32 acc.
        acc = jnp.dot(src_ref[pl.ds(0, H), :], t_ref[0],
                      preferred_element_type=jnp.float32)
        acc = acc + jnp.dot(src_ref[pl.ds(1, H), :], t_ref[1],
                            preferred_element_type=jnp.float32)
        acc = acc + jnp.dot(src_ref[pl.ds(2, H), :], t_ref[2],
                            preferred_element_type=jnp.float32)
        return acc

    # Stage H-padded input: zero only the 2 halo rows, then write the interior.
    xp_ref[pl.ds(0, 1), :] = jnp.zeros((1, wcin), jnp.float32)
    xp_ref[pl.ds(H + 1, 1), :] = jnp.zeros((1, wcin), jnp.float32)
    xp_ref[pl.ds(1, H), :] = x_ref[0]

    # conv1 (BN1 folded) + bias + relu
    h = jnp.maximum(conv_rows(xp_ref, t1_ref) + b1_ref[...], 0.0)

    # Stage H-padded intermediate in VMEM; it never touches HBM.
    hp_ref[pl.ds(0, 1), :] = jnp.zeros((1, wcmid), jnp.float32)
    hp_ref[pl.ds(H + 1, 1), :] = jnp.zeros((1, wcmid), jnp.float32)
    hp_ref[pl.ds(1, H), :] = h

    # conv2 (BN2 folded) + bias + residual (same layout, no reshape) + relu
    y = conv_rows(hp_ref, t2_ref) + b2_ref[...]
    y = jnp.maximum(y + x_ref[0], 0.0)
    out_ref[0] = y


def _decoder_block_pallas(x_rows, t1, b1, t2, b2):
    """x_rows: (N, H, W*Cin); t: (3, W*Ci, W*Co) Toeplitz weights; b: (1, W*Co)."""
    N, H, wcin = x_rows.shape
    wcmid = t1.shape[-1]
    wcout = t2.shape[-1]

    flops = 2 * N * 3 * H * (wcin * wcmid + wcmid * wcout)
    bytes_accessed = 4 * (x_rows.size + t1.size + b1.size + t2.size + b2.size
                          + N * H * wcout)

    return pl.pallas_call(
        _decoder_block_kernel,
        out_shape=jax.ShapeDtypeStruct((N, H, wcout), jnp.float32),
        grid=(N,),
        in_specs=[
            pl.BlockSpec((1, H, wcin), lambda n: (n, 0, 0)),
            pl.BlockSpec((3, wcin, wcmid), lambda n: (0, 0, 0)),
            pl.BlockSpec((1, wcmid), lambda n: (0, 0)),
            pl.BlockSpec((3, wcmid, wcout), lambda n: (0, 0, 0)),
            pl.BlockSpec((1, wcout), lambda n: (0, 0)),
        ],
        out_specs=pl.BlockSpec((1, H, wcout), lambda n: (n, 0, 0)),
        scratch_shapes=[
            pltpu.VMEM((H + 2, wcin), jnp.float32),
            pltpu.VMEM((H + 2, wcmid), jnp.float32),
        ],
        compiler_params=pltpu.CompilerParams(
            dimension_semantics=("parallel",)),
        cost_estimate=pl.CostEstimate(
            flops=flops, transcendentals=0, bytes_accessed=bytes_accessed),
    )(x_rows, t1, b1, t2, b2)


def _fold_bn_into_conv(w_hwio, gamma, beta, mean, var, eps=1e-5):
    """Fold inference-mode BatchNorm into conv weights + per-channel bias."""
    scale = gamma / jnp.sqrt(var + eps)          # (Cout,)
    w_scaled = w_hwio * scale                    # broadcast over HWIO's last (Cout) dim
    bias = beta - mean * scale                   # (Cout,)
    return w_scaled, bias


def _make_row_toeplitz(w_hwio, W):
    """(3,3,Cin,Cout) HWIO 3x3 conv weights -> (3, W*Cin, W*Cout) block-Toeplitz.

    out_row[y] = sum_dy padded_rows[y+dy] @ T[dy] reproduces a padding=1 conv; the
    W-boundary padding is handled by zeros baked into T (im2col along W folded into
    the tiny weight tensor, so the kernel does no per-tap relayout).
    """
    KH, KW, Cin, Cout = w_hwio.shape
    t = jnp.zeros((KH, W, Cin, W, Cout), w_hwio.dtype)
    for dx in range(KW):
        # output pixel xo reads input pixel xi = xo + dx - 1 (padding=1)
        xo_lo = max(0, 1 - dx)
        xo_hi = min(W, W + 1 - dx)
        for xo in range(xo_lo, xo_hi):
            xi = xo + dx - 1
            t = t.at[:, xi, :, xo, :].set(w_hwio[:, dx, :, :])
    return t.reshape(KH, W * Cin, W * Cout)


@jax.jit
def decoder_block_forward(x_nchw, params):
    """Pallas implementation of DecoderBlock.forward (scale=1, upsample=None)."""
    N, Cin, H, W = x_nchw.shape
    Cmid = params["w1"].shape[-1]
    Cout = params["w2"].shape[-1]
    if Cin != Cout:
        # residual `out += identity` requires inplanes == planes for this config
        raise ValueError("DecoderBlock with scale=1/upsample=None needs Cin == Cout")

    # NCHW -> NHWC -> lane-dense (N, H, W*Cin) row slab (free HBM layout plumbing).
    x_rows = jnp.transpose(x_nchw, (0, 2, 3, 1)).reshape(N, H, W * Cin)

    w1, bias1 = _fold_bn_into_conv(params["w1"], params["bn1_gamma"],
                                   params["bn1_beta"], params["bn1_mean"],
                                   params["bn1_var"])
    w2, bias2 = _fold_bn_into_conv(params["w2"], params["bn2_gamma"],
                                   params["bn2_beta"], params["bn2_mean"],
                                   params["bn2_var"])

    t1 = _make_row_toeplitz(w1, W)               # (3, W*Cin,  W*Cmid)
    t2 = _make_row_toeplitz(w2, W)               # (3, W*Cmid, W*Cout)
    b1 = jnp.tile(bias1, W)[None, :]             # (1, W*Cmid)
    b2 = jnp.tile(bias2, W)[None, :]             # (1, W*Cout)

    out_rows = _decoder_block_pallas(x_rows, t1, b1, t2, b2)
    out = out_rows.reshape(N, H, W, Cout)
    return jnp.transpose(out, (0, 3, 1, 2))      # NHWC -> NCHW


def _reference_forward(x_nchw, params):
    """Pure-JAX reference (lax conv, BN applied after conv) for correctness check."""
    x = jnp.transpose(x_nchw, (0, 2, 3, 1))
    dn = jax.lax.conv_dimension_numbers(x.shape, params["w1"].shape,
                                        ("NHWC", "HWIO", "NHWC"))

    def conv(a, w):
        return jax.lax.conv_general_dilated(a, w, (1, 1), "SAME",
                                            dimension_numbers=dn)

    def bn(a, g, b, m, v, eps=1e-5):
        s = g / jnp.sqrt(v + eps)
        return a * s + (b - m * s)

    h = jnp.maximum(bn(conv(x, params["w1"]), params["bn1_gamma"],
                       params["bn1_beta"], params["bn1_mean"],
                       params["bn1_var"]), 0.0)
    out = bn(conv(h, params["w2"]), params["bn2_gamma"],
             params["bn2_beta"], params["bn2_mean"], params["bn2_var"])
    out = jnp.maximum(out + x, 0.0)
    return jnp.transpose(out, (0, 3, 1, 2))


if __name__ == "__main__":
    N, C, H, W = 2, 4, 16, 16  # inplanes = planes = C, scale = 1, upsample = None
    key = jax.random.PRNGKey(0)
    kx, kw1, kw2, kg1, kb1, km1, kv1, kg2, kb2, km2, kv2 = jax.random.split(key, 11)

    x = jax.random.normal(kx, (N, C, H, W), jnp.float32)  # NCHW like PyTorch

    params = {
        # conv weights stored as HWIO (3, 3, Cin, Cout)
        "w1": jax.random.normal(kw1, (3, 3, C, C), jnp.float32) * 0.2,
        "w2": jax.random.normal(kw2, (3, 3, C, C), jnp.float32) * 0.2,
        "bn1_gamma": 1.0 + 0.1 * jax.random.normal(kg1, (C,), jnp.float32),
        "bn1_beta": 0.1 * jax.random.normal(kb1, (C,), jnp.float32),
        "bn1_mean": 0.1 * jax.random.normal(km1, (C,), jnp.float32),
        "bn1_var": jax.random.uniform(kv1, (C,), jnp.float32, 0.5, 1.5),
        "bn2_gamma": 1.0 + 0.1 * jax.random.normal(kg2, (C,), jnp.float32),
        "bn2_beta": 0.1 * jax.random.normal(kb2, (C,), jnp.float32),
        "bn2_mean": 0.1 * jax.random.normal(km2, (C,), jnp.float32),
        "bn2_var": jax.random.uniform(kv2, (C,), jnp.float32, 0.5, 1.5),
    }

    out = decoder_block_forward(x, params)
    out = jax.block_until_ready(out)

    ref = _reference_forward(x, params)
    assert out.shape == (N, C, H, W)
    assert jnp.allclose(out, ref, atol=1e-4, rtol=1e-4), "mismatch vs JAX reference"

    print("KERNEL_OK")
</pallas_src>

<mosaic_0001>
module attributes {stable_mosaic.version = 11 : i64} {
  func.func @_decoder_block_kernel(%arg0: i32, %arg1: memref<1x16x64xf32, #tpu.memory_space<vmem>>, %arg2: memref<3x64x64xf32, #tpu.memory_space<vmem>>, %arg3: memref<1x64xf32, #tpu.memory_space<vmem>>, %arg4: memref<3x64x64xf32, #tpu.memory_space<vmem>>, %arg5: memref<1x64xf32, #tpu.memory_space<vmem>>, %arg6: memref<1x16x64xf32, #tpu.memory_space<vmem>>, %arg7: memref<18x64xf32, #tpu.memory_space<vmem>>, %arg8: memref<18x64xf32, #tpu.memory_space<vmem>>) attributes {dimension_semantics = [#tpu.dimension_semantics<parallel>], iteration_bounds = array<i64: 2>, scalar_prefetch = 0 : i64, scratch_operands = 2 : i64, tpu.core_type = #tpu.core_type<tc>, window_params = [{transform_indices = @transform_0, window_bounds = array<i64: 1, 16, 64>}, {pipeline_mode = #tpu.pipeline_mode<synchronous>, transform_indices = @transform_1, window_bounds = array<i64: 3, 64, 64>}, {pipeline_mode = #tpu.pipeline_mode<synchronous>, transform_indices = @transform_2, window_bounds = array<i64: 1, 64>}, {pipeline_mode = #tpu.pipeline_mode<synchronous>, transform_indices = @transform_3, window_bounds = array<i64: 3, 64, 64>}, {pipeline_mode = #tpu.pipeline_mode<synchronous>, transform_indices = @transform_4, window_bounds = array<i64: 1, 64>}, {transform_indices = @transform_5, window_bounds = array<i64: 1, 16, 64>}]} {
    %cst = arith.constant 0.000000e+00 : f32
    %0 = vector.broadcast %cst : f32 to vector<1x64xf32>
    %c0 = arith.constant 0 : index
    %c0_0 = arith.constant 0 : index
    %1 = vector.load %arg7[%c0, %c0_0] : memref<18x64xf32, #tpu.memory_space<vmem>>, vector<1x64xf32>
    tpu.vector_store %arg7[%c0, %c0_0], %0 {strides = array<i32>} : memref<18x64xf32, #tpu.memory_space<vmem>>, vector<1x64xf32>,
    %cst_1 = arith.constant 0.000000e+00 : f32
    %2 = vector.broadcast %cst_1 : f32 to vector<1x64xf32>
    %c17 = arith.constant 17 : index
    %c0_2 = arith.constant 0 : index
    %3 = vector.load %arg7[%c17, %c0_2] : memref<18x64xf32, #tpu.memory_space<vmem>>, vector<1x64xf32>
    tpu.vector_store %arg7[%c17, %c0_2], %2 {strides = array<i32>} : memref<18x64xf32, #tpu.memory_space<vmem>>, vector<1x64xf32>,
    %c0_3 = arith.constant 0 : index
    %c0_4 = arith.constant 0 : index
    %c0_5 = arith.constant 0 : index
    %4 = vector.load %arg1[%c0_3, %c0_4, %c0_5] : memref<1x16x64xf32, #tpu.memory_space<vmem>>, vector<1x16x64xf32>
    %5 = vector.shape_cast %4 : vector<1x16x64xf32> to vector<16x64xf32>
    %c1 = arith.constant 1 : index
    %c0_6 = arith.constant 0 : index
    %6 = vector.load %arg7[%c1, %c0_6] : memref<18x64xf32, #tpu.memory_space<vmem>>, vector<16x64xf32>
    tpu.vector_store %arg7[%c1, %c0_6], %5 {strides = array<i32>} : memref<18x64xf32, #tpu.memory_space<vmem>>, vector<16x64xf32>,
    %c0_7 = arith.constant 0 : index
    %c0_8 = arith.constant 0 : index
    %7 = vector.load %arg7[%c0_7, %c0_8] : memref<18x64xf32, #tpu.memory_space<vmem>>, vector<16x64xf32>
    %c0_9 = arith.constant 0 : index
    %c0_10 = arith.constant 0 : index
    %c0_11 = arith.constant 0 : index
    %8 = vector.load %arg2[%c0_9, %c0_10, %c0_11] : memref<3x64x64xf32, #tpu.memory_space<vmem>>, vector<1x64x64xf32>
    %9 = vector.shape_cast %8 : vector<1x64x64xf32> to vector<64x64xf32>
    %cst_12 = arith.constant dense<0.000000e+00> : vector<16x64xf32>
    %10 = tpu.matmul %7, %9, %cst_12 {dimension_numbers = #tpu.dot_dimension_numbers<[1], [0], [0], [1], [0, 0, 1, 1], [], []>} : vector<16x64xf32>, vector<64x64xf32>, vector<16x64xf32> -> vector<16x64xf32>
    %c1_13 = arith.constant 1 : index
    %c0_14 = arith.constant 0 : index
    %11 = vector.load %arg7[%c1_13, %c0_14] : memref<18x64xf32, #tpu.memory_space<vmem>>, vector<16x64xf32>
    %c1_15 = arith.constant 1 : index
    %c0_16 = arith.constant 0 : index
    %c0_17 = arith.constant 0 : index
    %12 = vector.load %arg2[%c1_15, %c0_16, %c0_17] : memref<3x64x64xf32, #tpu.memory_space<vmem>>, vector<1x64x64xf32>
    %13 = vector.shape_cast %12 : vector<1x64x64xf32> to vector<64x64xf32>
    %cst_18 = arith.constant dense<0.000000e+00> : vector<16x64xf32>
    %14 = tpu.matmul %11, %13, %cst_18 {dimension_numbers = #tpu.dot_dimension_numbers<[1], [0], [0], [1], [0, 0, 1, 1], [], []>} : vector<16x64xf32>, vector<64x64xf32>, vector<16x64xf32> -> vector<16x64xf32>
    %15 = arith.addf %10, %14 : vector<16x64xf32>
    %c2 = arith.constant 2 : index
    %c0_19 = arith.constant 0 : index
    %16 = vector.load %arg7[%c2, %c0_19] : memref<18x64xf32, #tpu.memory_space<vmem>>, vector<16x64xf32>
    %c2_20 = arith.constant 2 : index
    %c0_21 = arith.constant 0 : index
    %c0_22 = arith.constant 0 : index
    %17 = vector.load %arg2[%c2_20, %c0_21, %c0_22] : memref<3x64x64xf32, #tpu.memory_space<vmem>>, vector<1x64x64xf32>
    %18 = vector.shape_cast %17 : vector<1x64x64xf32> to vector<64x64xf32>
    %cst_23 = arith.constant dense<0.000000e+00> : vector<16x64xf32>
    %19 = tpu.matmul %16, %18, %cst_23 {dimension_numbers = #tpu.dot_dimension_numbers<[1], [0], [0], [1], [0, 0, 1, 1], [], []>} : vector<16x64xf32>, vector<64x64xf32>, vector<16x64xf32> -> vector<16x64xf32>
    %20 = arith.addf %15, %19 : vector<16x64xf32>
    %c0_24 = arith.constant 0 : index
    %c0_25 = arith.constant 0 : index
    %21 = vector.load %arg3[%c0_24, %c0_25] : memref<1x64xf32, #tpu.memory_space<vmem>>, vector<1x64xf32>
    %22 = vector.broadcast %21 : vector<1x64xf32> to vector<16x64xf32>
    %23 = arith.addf %20, %22 : vector<16x64xf32>
    %cst_26 = arith.constant 0.000000e+00 : f32
    %24 = vector.broadcast %cst_26 : f32 to vector<16x64xf32>
    %25 = arith.maximumf %23, %24 : vector<16x64xf32>
    %cst_27 = arith.constant 0.000000e+00 : f32
    %26 = vector.broadcast %cst_27 : f32 to vector<1x64xf32>
    %c0_28 = arith.constant 0 : index
    %c0_29 = arith.constant 0 : index
    %27 = vector.load %arg8[%c0_28, %c0_29] : memref<18x64xf32, #tpu.memory_space<vmem>>, vector<1x64xf32>
    tpu.vector_store %arg8[%c0_28, %c0_29], %26 {strides = array<i32>} : memref<18x64xf32, #tpu.memory_space<vmem>>, vector<1x64xf32>,
    %cst_30 = arith.constant 0.000000e+00 : f32
    %28 = vector.broadcast %cst_30 : f32 to vector<1x64xf32>
    %c17_31 = arith.constant 17 : index
    %c0_32 = arith.constant 0 : index
    %29 = vector.load %arg8[%c17_31, %c0_32] : memref<18x64xf32, #tpu.memory_space<vmem>>, vector<1x64xf32>
    tpu.vector_store %arg8[%c17_31, %c0_32], %28 {strides = array<i32>} : memref<18x64xf32, #tpu.memory_space<vmem>>, vector<1x64xf32>,
    %c1_33 = arith.constant 1 : index
    %c0_34 = arith.constant 0 : index
    %30 = vector.load %arg8[%c1_33, %c0_34] : memref<18x64xf32, #tpu.memory_space<vmem>>, vector<16x64xf32>
    tpu.vector_store %arg8[%c1_33, %c0_34], %25 {strides = array<i32>} : memref<18x64xf32, #tpu.memory_space<vmem>>, vector<16x64xf32>,
    %c0_35 = arith.constant 0 : index
    %c0_36 = arith.constant 0 : index
    %31 = vector.load %arg8[%c0_35, %c0_36] : memref<18x64xf32, #tpu.memory_space<vmem>>, vector<16x64xf32>
    %c0_37 = arith.constant 0 : index
    %c0_38 = arith.constant 0 : index
    %c0_39 = arith.constant 0 : index
    %32 = vector.load %arg4[%c0_37, %c0_38, %c0_39] : memref<3x64x64xf32, #tpu.memory_space<vmem>>, vector<1x64x64xf32>
    %33 = vector.shape_cast %32 : vector<1x64x64xf32> to vector<64x64xf32>
    %cst_40 = arith.constant dense<0.000000e+00> : vector<16x64xf32>
    %34 = tpu.matmul %31, %33, %cst_40 {dimension_numbers = #tpu.dot_dimension_numbers<[1], [0], [0], [1], [0, 0, 1, 1], [], []>} : vector<16x64xf32>, vector<64x64xf32>, vector<16x64xf32> -> vector<16x64xf32>
    %c1_41 = arith.constant 1 : index
    %c0_42 = arith.constant 0 : index
    %35 = vector.load %arg8[%c1_41, %c0_42] : memref<18x64xf32, #tpu.memory_space<vmem>>, vector<16x64xf32>
    %c1_43 = arith.constant 1 : index
    %c0_44 = arith.constant 0 : index
    %c0_45 = arith.constant 0 : index
    %36 = vector.load %arg4[%c1_43, %c0_44, %c0_45] : memref<3x64x64xf32, #tpu.memory_space<vmem>>, vector<1x64x64xf32>
    %37 = vector.shape_cast %36 : vector<1x64x64xf32> to vector<64x64xf32>
    %cst_46 = arith.constant dense<0.000000e+00> : vector<16x64xf32>
    %38 = tpu.matmul %35, %37, %cst_46 {dimension_numbers = #tpu.dot_dimension_numbers<[1], [0], [0], [1], [0, 0, 1, 1], [], []>} : vector<16x64xf32>, vector<64x64xf32>, vector<16x64xf32> -> vector<16x64xf32>
    %39 = arith.addf %34, %38 : vector<16x64xf32>
    %c2_47 = arith.constant 2 : index
    %c0_48 = arith.constant 0 : index
    %40 = vector.load %arg8[%c2_47, %c0_48] : memref<18x64xf32, #tpu.memory_space<vmem>>, vector<16x64xf32>
    %c2_49 = arith.constant 2 : index
    %c0_50 = arith.constant 0 : index
    %c0_51 = arith.constant 0 : index
    %41 = vector.load %arg4[%c2_49, %c0_50, %c0_51] : memref<3x64x64xf32, #tpu.memory_space<vmem>>, vector<1x64x64xf32>
    %42 = vector.shape_cast %41 : vector<1x64x64xf32> to vector<64x64xf32>
    %cst_52 = arith.constant dense<0.000000e+00> : vector<16x64xf32>
    %43 = tpu.matmul %40, %42, %cst_52 {dimension_numbers = #tpu.dot_dimension_numbers<[1], [0], [0], [1], [0, 0, 1, 1], [], []>} : vector<16x64xf32>, vector<64x64xf32>, vector<16x64xf32> -> vector<16x64xf32>
    %44 = arith.addf %39, %43 : vector<16x64xf32>
    %c0_53 = arith.constant 0 : index
    %c0_54 = arith.constant 0 : index
    %45 = vector.load %arg5[%c0_53, %c0_54] : memref<1x64xf32, #tpu.memory_space<vmem>>, vector<1x64xf32>
    %46 = vector.broadcast %45 : vector<1x64xf32> to vector<16x64xf32>
    %47 = arith.addf %44, %46 : vector<16x64xf32>
    %c0_55 = arith.constant 0 : index
    %c0_56 = arith.constant 0 : index
    %c0_57 = arith.constant 0 : index
    %48 = vector.load %arg1[%c0_55, %c0_56, %c0_57] : memref<1x16x64xf32, #tpu.memory_space<vmem>>, vector<1x16x64xf32>
    %49 = vector.shape_cast %48 : vector<1x16x64xf32> to vector<16x64xf32>
    %50 = arith.addf %47, %49 : vector<16x64xf32>
    %cst_58 = arith.constant 0.000000e+00 : f32
    %51 = vector.broadcast %cst_58 : f32 to vector<16x64xf32>
    %52 = arith.maximumf %50, %51 : vector<16x64xf32>
    %c0_59 = arith.constant 0 : index
    %c0_60 = arith.constant 0 : index
    %c0_61 = arith.constant 0 : index
    %53 = vector.load %arg6[%c0_59, %c0_60, %c0_61] : memref<1x16x64xf32, #tpu.memory_space<vmem>>, vector<1x16x64xf32>
    %54 = vector.shape_cast %53 : vector<1x16x64xf32> to vector<16x64xf32>
    %55 = vector.shape_cast %52 : vector<16x64xf32> to vector<1x16x64xf32>
    tpu.vector_store %arg6[%c0_59, %c0_60, %c0_61], %55 {strides = array<i32>} : memref<1x16x64xf32, #tpu.memory_space<vmem>>, vector<1x16x64xf32>,
    return
  }
  func.func @transform_0(%arg0: i32) -> (i32, i32, i32) {
    %c0_i32 = arith.constant 0 : i32
    %c0_i32_0 = arith.constant 0 : i32
    %c0_i32_1 = arith.constant 0 : i32
    return %arg0, %c0_i32, %c0_i32_0 : i32, i32, i32
  }
  func.func @transform_1(%arg0: i32) -> (i32, i32, i32) {
    %c0_i32 = arith.constant 0 : i32
    %c0_i32_0 = arith.constant 0 : i32
    %c0_i32_1 = arith.constant 0 : i32
    %c0_i32_2 = arith.constant 0 : i32
    return %c0_i32, %c0_i32_0, %c0_i32_1 : i32, i32, i32
  }
  func.func @transform_2(%arg0: i32) -> (i32, i32) {
    %c0_i32 = arith.constant 0 : i32
    %c0_i32_0 = arith.constant 0 : i32
    %c0_i32_1 = arith.constant 0 : i32
    return %c0_i32, %c0_i32_0 : i32, i32
  }
  func.func @transform_3(%arg0: i32) -> (i32, i32, i32) {
    %c0_i32 = arith.constant 0 : i32
    %c0_i32_0 = arith.constant 0 : i32
    %c0_i32_1 = arith.constant 0 : i32
    %c0_i32_2 = arith.constant 0 : i32
    return %c0_i32, %c0_i32_0, %c0_i32_1 : i32, i32, i32
  }
  func.func @transform_4(%arg0: i32) -> (i32, i32) {
    %c0_i32 = arith.constant 0 : i32
    %c0_i32_0 = arith.constant 0 : i32
    %c0_i32_1 = arith.constant 0 : i32
    return %c0_i32, %c0_i32_0 : i32, i32
  }
  func.func @transform_5(%arg0: i32) -> (i32, i32, i32) {
    %c0_i32 = arith.constant 0 : i32
    %c0_i32_0 = arith.constant 0 : i32
    %c0_i32_1 = arith.constant 0 : i32
    return %arg0, %c0_i32, %c0_i32_0 : i32, i32, i32
  }
}

</mosaic_0001>

<bundles_post_ra>
// kernel: tile.13
= control target key start
LH: loop header
LB: loop body
LE: loop exit
PB: predicated region body
PF: predicated region fallthrough
CT: control target
= control target key end

     0   :  { %s28_s0 = inlined_call_operand.vmem [shape: f32[4], index: 0, kind: input, shape index: {}]   ;;  %s29_s1 = inlined_call_operand.vmem [shape: f32[16,4], index: 1, kind: output, shape index: {}]  }
   0x1   :  { %v4_v0 = vld [vmem:[%s28_s0] ss:$0 sm:$0xff] }
   0x2   :  { %5 = vst [vmem:[%s29_s1] sm:$0xff] %v4_v0  ;;  %8 = vst [vmem:[%s29_s1 + $0x8] sm:$0xff] %v4_v0 }

// kernel: tile.14
= control target key start
LH: loop header
LB: loop body
LE: loop exit
PB: predicated region body
PF: predicated region fallthrough
CT: control target
= control target key end

     0   :  { %s131_s10 = smov 60   ;;  %s132_s11 = smov 52   ;;  %vm3_vm0 = vcmask 31744   ;;  %vm9_vm1 = vcmask 523744   ;;  %vm15_vm2 = vcmask 490944   ;;  %vm21_vm3 = vcmask 458144   ;;  %s207_s0 = inlined_call_operand.vmem [shape: f32[16,4], index: 0, kind: input, shape index: {}]   ;;  %s208_s1 = inlined_call_operand.vmem [shape: f32[1,64], index: 1, kind: output, shape index: {}]  }
   0x1   :  { %v101_v0 = vld [vmem:[%s207_s0 + $0xf] sm:$0x1]   ;;  %v103_v1 = vld [vmem:[%s207_s0 + $0xd] sm:$0x1]   ;;  %v102_v2 = vld [vmem:[%s207_s0 + $0xe] sm:$0x1]  }
   0x2   :  { %7 = vrot.lane.b32.xlu0 %v101_v0, %s131_s10  ;;  %19 = vrot.lane.b32.xlu1 %v103_v1, %s132_s11  ;;  %v104_v3 = vld [vmem:[%s207_s0 + $0xc] sm:$0x1]   ;;  %s133_s16 = smov 56   ;;  %s134_s17 = smov 48   ;;  %v105_v4 = vld [vmem:[%s207_s0 + $0xb] sm:$0x1]  }
   0x3   :  { %v106_v5 = vld [vmem:[%s207_s0 + $0xa] sm:$0x1]   ;;  %v2_v6 = vld [vmem:[%s207_s0] sm:$0x1]   ;;  %s135_s24 = smov 44   ;;  %s136_s25 = smov 40  }
   0x4   :  { %4 = vst.msk [vmem:[#allocation0] sm:$0x1] %vm3_vm0, %v2_v6   ;;  %v107_v7 = vld [vmem:[%s207_s0 + $0x9] sm:$0x1]   ;;  %v108_v8 = vld [vmem:[%s207_s0 + $0x8] sm:$0x1]  }
   0x5   :  { %s137_s30 = smov 36   ;;  %s138_s2 = smov 32   ;;  %v109_v9 = vld [vmem:[%s207_s0 + $0x7] sm:$0x1]   ;;  %v110_v10 = vld [vmem:[%s207_s0 + $0x6] sm:$0x1]  }
   0x6   :  { %13 = vrot.lane.b32.xlu0 %v102_v2, %s133_s16  ;;  %25 = vrot.lane.b32.xlu1 %v104_v3, %s134_s17  ;;  %s139_s7 = smov 28   ;;  %s140_s8 = smov 24   ;;  %v111_v11 = vld [vmem:[%s207_s0 + $0x5] sm:$0x1]   ;;  %v112_v12 = vld [vmem:[%s207_s0 + $0x4] sm:$0x1]  }
   0x7   :  { %s141_s13 = smov 20   ;;  %s142_s14 = smov 16   ;;  %v113_v13 = vld [vmem:[%s207_s0 + $0x3] sm:$0x1]   ;;  %v114_v14 = vld [vmem:[%s207_s0 + $0x2] sm:$0x1]  }
   0x8   :  { %s143_s19 = smov 12   ;;  %s144_s20 = smov 8   ;;  %v115_v15 = vld [vmem:[%s207_s0 + $0x1] sm:$0x1]   ;;  %vm27_vm4 = vcmask 425344   ;;  %vm33_vm5 = vcmask 392544  }
   0x9   :  { %s145_s0 = smov 4   ;;  %vm39_vm6 = vcmask 359744   ;;  %vm45_vm7 = vcmask 326944   ;;  %vm51_vm8 = vcmask 294144   ;;  %vm57_vm9 = vcmask 261344  }
   0xa   :  { %31 = vrot.lane.b32.xlu0 %v105_v4, %s135_s24  ;;  %37 = vrot.lane.b32.xlu1 %v106_v5, %s136_s25  ;;  %vm63_vm10 = vcmask 228544   ;;  %vm69_vm11 = vcmask 195744   ;;  %vm75_vm12 = vcmask 162944   ;;  %vm81_vm13 = vcmask 130144  }
   0xb   :  { %vm87_vm14 = vcmask 97344   ;;  %vm93_vm15 = vcmask 64544  }
   0xe   :  { %43 = vrot.lane.b32.xlu0 %v107_v7, %s137_s30  ;;  %49 = vrot.lane.b32.xlu1 %v108_v8, %s138_s2 }
  0x12   :  { %55 = vrot.lane.b32.xlu0 %v109_v9, %s139_s7  ;;  %61 = vrot.lane.b32.xlu1 %v110_v10, %s140_s8 }
  0x16   :  { %67 = vrot.lane.b32.xlu0 %v111_v11, %s141_s13  ;;  %73 = vrot.lane.b32.xlu1 %v112_v12, %s142_s14 }
  0x1a   :  { %79 = vrot.lane.b32.xlu0 %v113_v13, %s143_s19  ;;  %85 = vrot.lane.b32.xlu1 %v114_v14, %s144_s20 }
  0x1e   :  { %91 = vrot.lane.b32.xlu0 %v115_v15, %s145_s0 }
  0x74   :  { %v8_v16 = vpop.permute.xlu0 %7   ;;  %v20_v17 = vpop.permute.xlu1 %19  }
  0x75   :  { %10 = vst.msk [vmem:[#allocation0] sm:$0x1] %vm9_vm1, %v8_v16  }
  0x78   :  { %v14_v18 = vpop.permute.xlu0 %13   ;;  %v26_v19 = vpop.permute.xlu1 %25  }
  0x79   :  { %16 = vst.msk [vmem:[#allocation0] sm:$0x1] %vm15_vm2, %v14_v18  }
  0x7a   :  { %22 = vst.msk [vmem:[#allocation0] sm:$0x1] %vm21_vm3, %v20_v17  }
  0x7b   :  { %28 = vst.msk [vmem:[#allocation0] sm:$0x1] %vm27_vm4, %v26_v19  }
  0x7c   :  { %v32_v20 = vpop.permute.xlu0 %31   ;;  %v38_v21 = vpop.permute.xlu1 %37  }
  0x7d   :  { %34 = vst.msk [vmem:[#allocation0] sm:$0x1] %vm33_vm5, %v32_v20  }
  0x7e   :  { %40 = vst.msk [vmem:[#allocation0] sm:$0x1] %vm39_vm6, %v38_v21  }
  0x80   :  { %v44_v22 = vpop.permute.xlu0 %43   ;;  %v50_v23 = vpop.permute.xlu1 %49  }
  0x81   :  { %46 = vst.msk [vmem:[#allocation0] sm:$0x1] %vm45_vm7, %v44_v22  }
  0x82   :  { %52 = vst.msk [vmem:[#allocation0] sm:$0x1] %vm51_vm8, %v50_v23  }
  0x84   :  { %v56_v24 = vpop.permute.xlu0 %55   ;;  %v62_v25 = vpop.permute.xlu1 %61  }
  0x85   :  { %58 = vst.msk [vmem:[#allocation0] sm:$0x1] %vm57_vm9, %v56_v24  }
  0x86   :  { %64 = vst.msk [vmem:[#allocation0] sm:$0x1] %vm63_vm10, %v62_v25  }
  0x88   :  { %v68_v26 = vpop.permute.xlu0 %67   ;;  %v74_v27 = vpop.permute.xlu1 %73  }
  0x89   :  { %70 = vst.msk [vmem:[#allocation0] sm:$0x1] %vm69_vm11, %v68_v26  }
  0x8a   :  { %76 = vst.msk [vmem:[#allocation0] sm:$0x1] %vm75_vm12, %v74_v27  }
  0x8c   :  { %v80_v28 = vpop.permute.xlu0 %79   ;;  %v86_v29 = vpop.permute.xlu1 %85  }
  0x8d   :  { %82 = vst.msk [vmem:[#allocation0] sm:$0x1] %vm81_vm13, %v80_v28  }
  0x8e   :  { %88 = vst.msk [vmem:[#allocation0] sm:$0x1] %vm87_vm14, %v86_v29  }
  0x90   :  { %v92_v30 = vpop.permute.xlu0 %91  }
  0x91   :  { %94 = vst.msk [vmem:[#allocation0] sm:$0x1] %vm93_vm15, %v92_v30  }
  0x98   :  { %v98_v31 = vld [vmem:[#allocation0] sm:$0x1] }
  0x99   :  { %100 = vst [vmem:[%s208_s1] sm:$0x1] %v98_v31 }

// kernel: decoder_block_forward.1
= control target key start
LH: loop header
LB: loop body
LE: loop exit
PB: predicated region body
PF: predicated region fallthrough
CT: control target
= control target key end

     0   :  { %s1259_s18 = smov 0   ;;  %s1459_s0 = inlined_call_operand.vmem [shape: f32[2,16,64], index: 0, kind: input, shape index: {}]   ;;  %s1460_s1 = inlined_call_operand.vmem [shape: f32[3,64,64], index: 1, kind: input, shape index: {}]   ;;  %s1461_s2 = inlined_call_operand.vmem [shape: f32[1,64], index: 2, kind: input, shape index: {}]   ;;  %s1462_s3 = inlined_call_operand.vmem [shape: f32[3,64,64], index: 3, kind: input, shape index: {}]   ;;  %s1463_s4 = inlined_call_operand.vmem [shape: f32[1,64], index: 4, kind: input, shape index: {}]   ;;  %s1464_s5 = inlined_call_operand.vmem [shape: f32[2,16,64], index: 5, kind: output, shape index: {}]  }
   0x1 LB: > { %s874_s19 = sadd.s32 4294967295, %s1226_s18   ;;  %p878_p0 = scmp.ge.s32.totalorder %s1226_s18, 1  ;;  %s1226_s18 = sphi %s1259_s18, %s15_s18  }
   0x2   : > { %p187_p1 = scmp.lt.s32.totalorder %s1226_s18, 3 }
   0x4   : > { %p188_p2 = pnand %p878_p0, %p187_p1 }
   0x5   : > { %v883_v0 = vld [vmem:[%s1460_s1 + $0x40] sm:$0xff] (!%p188_p2)  ;;  %v884_v1 = vld [vmem:[%s1460_s1 + $0x48] sm:$0xff] (!%p188_p2)  ;;  %v885_v2 = vld [vmem:[%s1460_s1 + $0x50] sm:$0xff] (!%p188_p2)  ;;  %p215_p3 = scmp.lt.s32.totalorder (!%p188_p2), %s874_s19, 1  ;;  %vm225_vm0 = vcmask (!%p188_p2), 516096   ;;  %v1228_v8 = vmov (!%p188_p2), 0.0  }
   0x6   : > { %191 = sbr.rel (%p188_p2) target bundleno = 536 (0x218), region = 40  ;;  %v1107_v3 = vpack.c.bf16 (!%p188_p2), %v884_v1, %v883_v0  ;;  %v886_v4 = vld [vmem:[%s1460_s1 + $0x58] sm:$0xff] (!%p188_p2)  ;;  %v887_v6 = vld [vmem:[%s1460_s1 + $0x60] sm:$0xff] (!%p188_p2)  ;;  %v888_v7 = vld [vmem:[%s1460_s1 + $0x68] sm:$0xff] (!%p188_p2)  ;;  %226 = vst.msk [vmem:[#allocation2] sm:$0x1] (!%p188_p2), %vm225_vm0, %v1228_v8 }
   0x7   : > { %v1111_v5 = vpack.c.bf16 (!%p188_p2), %v886_v4, %v885_v2  ;;  %227 = vst.msk [vmem:[#allocation2 + $0x11] sm:$0x1] (!%p188_p2), %vm225_vm0, %v1228_v8  ;;  %521 = vst.msk [vmem:[#allocation3] sm:$0x1] (!%p188_p2), %vm225_vm0, %v1228_v8  ;;  %vm230_vm1 = vcmask (!%p188_p2), 523264   ;;  %v1115_v9 = vpack.c.bf16 (!%p188_p2), %v888_v7, %v887_v6  ;;  %v889_v10 = vld [vmem:[%s1460_s1 + $0x70] sm:$0xff] (!%p188_p2) }
   0x8   : > { %522 = vst.msk [vmem:[#allocation3 + $0x11] sm:$0x1] (!%p188_p2), %vm225_vm0, %v1228_v8  ;;  %1108 = vmatprep.subr.bf16.mxu0 (!%p188_p2), %v1107_v3  ;;  %v890_v11 = vld [vmem:[%s1460_s1 + $0x78] sm:$0xff] (!%p188_p2)  ;;  %v906_v14 = vld [vmem:[%s1462_s3 + $0x40] sm:$0xff] (!%p188_p2)  ;;  %v907_v16 = vld [vmem:[%s1462_s3 + $0x48] sm:$0xff] (!%p188_p2) }
   0x9   : > { %1110 = vmatpush3.bf16.msra.mxu0 (!%p188_p2), %v1107_v3  ;;  %v1119_v15 = vpack.c.bf16 (!%p188_p2), %v890_v11, %v889_v10  ;;  %v235_v17 = vld [vmem:[%s1460_s1] sm:$0xff] (!%p188_p2)  ;;  %v236_v18 = vld [vmem:[%s1460_s1 + $0x8] sm:$0xff] (!%p188_p2)  ;;  %v1155_v19 = vpack.c.bf16 (!%p188_p2), %v907_v16, %v906_v14  ;;  %v237_v22 = vld [vmem:[%s1460_s1 + $0x10] sm:$0xff] (!%p188_p2) }
   0xa   : > { %1112 = vmatprep.subr.bf16.mxu0 (!%p188_p2), %v1111_v5  ;;  %v1123_v20 = vpack.c.bf16 (!%p188_p2), %v236_v18, %v235_v17  ;;  %v238_v23 = vld [vmem:[%s1460_s1 + $0x18] sm:$0xff] (!%p188_p2)  ;;  %v239_v27 = vld [vmem:[%s1460_s1 + $0x20] sm:$0xff] (!%p188_p2)  ;;  %v240_v28 = vld [vmem:[%s1460_s1 + $0x28] sm:$0xff] (!%p188_p2) }
   0xb   : > { %1156 = vmatprep.subr.bf16.mxu1 (!%p188_p2), %v1155_v19  ;;  %v1127_v25 = vpack.c.bf16 (!%p188_p2), %v238_v23, %v237_v22  ;;  %v1131_v29 = vpack.c.bf16 (!%p188_p2), %v240_v28, %v239_v27  ;;  %v241_v30 = vld [vmem:[%s1460_s1 + $0x30] sm:$0xff] (!%p188_p2)  ;;  %v242_v31 = vld [vmem:[%s1460_s1 + $0x38] sm:$0xff] (!%p188_p2)  ;;  %v895_v33 = vld [vmem:[%s1460_s1 + $0x80] sm:$0xff] (!%p188_p2) }
   0xc   : > { %1158 = vmatpush3.bf16.msra.mxu1 (!%p188_p2), %v1155_v19  ;;  %v1135_v32 = vpack.c.bf16 (!%p188_p2), %v242_v31, %v241_v30  ;;  %v896_v34 = vld [vmem:[%s1460_s1 + $0x88] sm:$0xff] (!%p188_p2)  ;;  %v897_v36 = vld [vmem:[%s1460_s1 + $0x90] sm:$0xff] (!%p188_p2)  ;;  %v898_v37 = vld [vmem:[%s1460_s1 + $0x98] sm:$0xff] (!%p188_p2) }
   0xd   : > { %s1466_s19 = smov (!%p215_p3, %s874_s19), 1  ;;  %1114 = vmatpush3.bf16.msra.mxu0 %v1111_v5  ;;  %v1139_v35 = vpack.c.bf16 %v896_v34, %v895_v33  ;;  %v1143_v39 = vpack.c.bf16 %v898_v37, %v897_v36  ;;  %v899_v41 = vld [vmem:[%s1460_s1 + $0xa0] sm:$0xff]  ;;  %v900_v42 = vld [vmem:[%s1460_s1 + $0xa8] sm:$0xff]  ;;  %v901_v44 = vld [vmem:[%s1460_s1 + $0xb0] sm:$0xff] }
   0xe   : > { %s931_s7 = sshll.u32 %s1466_s19, 4  ;;  %1116 = vmatprep.subr.bf16.mxu0 %v1115_v9  ;;  %v1147_v43 = vpack.c.bf16 %v900_v42, %v899_v41  ;;  %v902_v45 = vld [vmem:[%s1460_s1 + $0xb8] sm:$0xff]  ;;  %v908_v48 = vld [vmem:[%s1462_s3 + $0x50] sm:$0xff]  ;;  %v910_v51 = vld [vmem:[%s1462_s3 + $0x60] sm:$0xff] }
   0xf   : > { %s219_s12 = scalar_lea.vmem %s1459_s0, %s931_s7  ;;  %v1151_v46 = vpack.c.bf16 %v902_v45, %v901_v44  ;;  %v909_v49 = vld [vmem:[%s1462_s3 + $0x58] sm:$0xff]  ;;  %v911_v52 = vld [vmem:[%s1462_s3 + $0x68] sm:$0xff]  ;;  %v912_v54 = vld [vmem:[%s1462_s3 + $0x70] sm:$0xff]  ;;  %s224_s13 = scalar_lea.vmem %s1464_s5, %s931_s7 }
  0x10   : > { %v1299_v12 = vld [vmem:[%s219_s12] sm:$0xff]  ;;  %v1301_v13 = vld [vmem:[%s219_s12 + $0x8] sm:$0xff]  ;;  %v1159_v50 = vpack.c.bf16 %v909_v49, %v908_v48  ;;  %v1163_v53 = vpack.c.bf16 %v911_v52, %v910_v51  ;;  %v913_v55 = vld [vmem:[%s1462_s3 + $0x78] sm:$0xff] }
  0x11   : > { %231 = vst.msk [vmem:[#allocation2 + $0x1] sm:$0xff] %vm230_vm1, %v1299_v12  ;;  %232 = vst.msk [vmem:[#allocation2 + $0x9] sm:$0xff] %vm230_vm1, %v1301_v13  ;;  %1118 = vmatpush3.bf16.msra.mxu0 %v1115_v9  ;;  %v1167_v56 = vpack.c.bf16 %v913_v55, %v912_v54  ;;  %v527_v57 = vld [vmem:[%s1462_s3] sm:$0xff]  ;;  %v528_v58 = vld [vmem:[%s1462_s3 + $0x8] sm:$0xff] }
  0x12   : > { %1120 = vmatprep.subr.bf16.mxu0 %v1119_v15  ;;  %1160 = vmatprep.subr.bf16.mxu1 %v1159_v50  ;;  %v1171_v59 = vpack.c.bf16 %v528_v58, %v527_v57  ;;  %v905_v60 = vld [vmem:[%s1461_s2] ss:$0 sm:$0xff]  ;;  %v529_v3 = vld [vmem:[%s1462_s3 + $0x10] sm:$0xff]  ;;  %v530_v4 = vld [vmem:[%s1462_s3 + $0x18] sm:$0xff] }
  0x13   : > { %1162 = vmatpush3.bf16.msra.mxu1 %v1159_v50  ;;  %v1175_v6 = vpack.c.bf16 %v530_v4, %v529_v3  ;;  %v531_v8 = vld [vmem:[%s1462_s3 + $0x20] sm:$0xff]  ;;  %v532_v9 = vld [vmem:[%s1462_s3 + $0x28] sm:$0xff]  ;;  %v533_v14 = vld [vmem:[%s1462_s3 + $0x30] sm:$0xff] }
  0x14   : > { %1164 = vmatprep.subr.bf16.mxu1 %v1163_v53  ;;  %v1179_v11 = vpack.c.bf16 %v532_v9, %v531_v8  ;;  %v918_v17 = vld [vmem:[%s1462_s3 + $0x80] sm:$0xff]  ;;  %v919_v18 = vld [vmem:[%s1462_s3 + $0x88] sm:$0xff]  ;;  %v924_v28 = vld [vmem:[%s1462_s3 + $0xb0] sm:$0xff] }
  0x15   : > { %1122 = vmatpush3.bf16.msra.mxu0 %v1119_v15  ;;  %v534_v15 = vld [vmem:[%s1462_s3 + $0x38] sm:$0xff]  ;;  %v1187_v19 = vpack.c.bf16 %v919_v18, %v918_v17 }
  0x16   : > { %1124 = vmatprep.subr.bf16.mxu0 %v1123_v20  ;;  %v1183_v16 = vpack.c.bf16 %v534_v15, %v533_v14 }
  0x17   : > { %1166 = vmatpush3.bf16.msra.mxu1 %v1163_v53 }
  0x18   : > { %v243_v21 = vld [vmem:[#allocation2 + $0x1] sm:$0xff]  ;;  %v244_v24 = vld [vmem:[#allocation2 + $0x9] sm:$0xff]  ;;  %1168 = vmatprep.subr.bf16.mxu1 %v1167_v56 }
  0x19   : > { %1009 = vmatprep.mubr.msk.f32.mxu0 %vm230_vm1, %v243_v21  ;;  %v233_v26 = vld [vmem:[#allocation2] sm:$0xff]  ;;  %v234_v38 = vld [vmem:[#allocation2 + $0x8] sm:$0xff]  ;;  %v921_v21 = vld [vmem:[%s1462_s3 + $0x98] sm:$0xff] }
  0x1a   : > { %1010 = vmatmul.mubr.msk.f32.vlgmr.msra.gmra.mrb[0].mxu0 %vm230_vm1, %v244_v24  ;;  %v416_v40 = vld [vmem:[#allocation2 + $0x2] sm:$0xff]  ;;  %v417_v47 = vld [vmem:[#allocation2 + $0xa] sm:$0xff] }
  0x1b   : > { %1126 = vmatpush3.bf16.msra.mxu0 %v1123_v20  ;;  %1028 = vmatprep.mubr.msk.f32.mxu0 %vm230_vm1, %v233_v26  ;;  %v920_v20 = vld [vmem:[%s1462_s3 + $0x90] sm:$0xff]  ;;  %v922_v24 = vld [vmem:[%s1462_s3 + $0xa0] sm:$0xff] }
  0x1c   : > { %1128 = vmatprep.subr.bf16.mxu0 %v1127_v25  ;;  %1170 = vmatpush3.bf16.msra.mxu1 %v1167_v56  ;;  %v1191_v22 = vpack.c.bf16 %v921_v21, %v920_v20 }
  0x1d   : > { %1172 = vmatprep.subr.bf16.mxu1 %v1171_v59 }
  0x1f   : > { %1130 = vmatpush3.bf16.msra.mxu0 %v1127_v25  ;;  %v923_v25 = vld [vmem:[%s1462_s3 + $0xa8] sm:$0xff] }
  0x20   : > { %1132 = vmatprep.subr.bf16.mxu0 %v1131_v29  ;;  %v1195_v27 = vpack.c.bf16 %v923_v25, %v922_v24 }
  0x23   : > { %1134 = vmatpush3.bf16.msra.mxu0 %v1131_v29  ;;  %v925_v29 = vld [vmem:[%s1462_s3 + $0xb8] sm:$0xff] }
  0x24   : > { %1136 = vmatprep.subr.bf16.mxu0 %v1135_v32  ;;  %v1199_v30 = vpack.c.bf16 %v925_v29, %v924_v28 }
  0x27   : > { %1138 = vmatpush3.bf16.msra.mxu0 %v1135_v32  ;;  %v928_v32 = vld [vmem:[%s1463_s4] ss:$0 sm:$0xff] }
  0x28   : > { %1140 = vmatprep.subr.bf16.mxu0 %v1139_v35 }
  0x2a   : > { %1029 = vmatmul.mubr.msk.f32.vlgmr.msra.gmra.mrb[0].mxu0 %vm230_vm1, %v234_v38 }
  0x2b   : > { %1142 = vmatpush3.bf16.msra.mxu0 %v1139_v35  ;;  %1047 = vmatprep.mubr.msk.f32.mxu0 %vm230_vm1, %v416_v40 }
  0x2c   : > { %1144 = vmatprep.subr.bf16.mxu0 %v1143_v39 }
  0x2f   : > { %1146 = vmatpush3.bf16.msra.mxu0 %v1143_v39 }
  0x30   : > { %1148 = vmatprep.subr.bf16.mxu0 %v1147_v43 }
  0x33   : > { %1150 = vmatpush3.bf16.msra.mxu0 %v1147_v43 }
  0x34   : > { %1152 = vmatprep.subr.bf16.mxu0 %v1151_v46 }
  0x37   : > { %1154 = vmatpush3.bf16.msra.mxu0 %v1151_v46 }
  0x3a   : > { %1048 = vmatmul.mubr.msk.f32.vlgmr.msra.gmra.mrb[0].mxu0 %vm230_vm1, %v417_v47 }
 0x10d   : > { %v1049_v61 = vpop.f32.mrb[0].mxu0 }
 0x10e   : > { %v518_v62 = vadd.f32 %v1049_v61, %v905_v60  ;;  %v499_v63 = vpop.f32.mrb[1].mxu0 }
 0x10f   : > { %v517_v0 = vadd.f32 %v905_v60, %v499_v63 }
 0x110   : > { %v520_v1 = vmax.f32 %v518_v62, 0.0 }
 0x111   : > { %v519_v2 = vmax.f32 %v517_v0, 0.0 }
 0x112   : > { %524 = vst.msk [vmem:[#allocation3 + $0x9] sm:$0xff] %vm230_vm1, %v520_v1 }
 0x113   : > { %523 = vst.msk [vmem:[#allocation3 + $0x1] sm:$0xff] %vm230_vm1, %v519_v2 }
 0x119   : > { %v536_v7 = vld [vmem:[#allocation3 + $0x9] sm:$0xff] }
 0x11a   : > { %v535_v5 = vld [vmem:[#allocation3 + $0x1] sm:$0xff]  ;;  %v709_v31 = vld [vmem:[#allocation3 + $0xa] sm:$0xff] }
 0x11b   : > { %1066 = vmatprep.mubr.msk.f32.mxu1 %vm230_vm1, %v535_v5  ;;  %v525_v10 = vld [vmem:[#allocation3] sm:$0xff]  ;;  %v526_v23 = vld [vmem:[#allocation3 + $0x8] sm:$0xff] }
 0x11c   : > { %1067 = vmatmul.mubr.msk.f32.vlgmr.msra.gmra.mrb[0].mxu1 %vm230_vm1, %v536_v7  ;;  %v708_v26 = vld [vmem:[#allocation3 + $0x2] sm:$0xff] }
 0x11d   : > { %1174 = vmatpush3.bf16.msra.mxu1 %v1171_v59  ;;  %1085 = vmatprep.mubr.msk.f32.mxu1 %vm230_vm1, %v525_v10 }
 0x11e   : > { %1176 = vmatprep.subr.bf16.mxu1 %v1175_v6 }
 0x121   : > { %1178 = vmatpush3.bf16.msra.mxu1 %v1175_v6 }
 0x122   : > { %1180 = vmatprep.subr.bf16.mxu1 %v1179_v11 }
 0x125   : > { %1182 = vmatpush3.bf16.msra.mxu1 %v1179_v11 }
 0x126   : > { %1184 = vmatprep.subr.bf16.mxu1 %v1183_v16 }
 0x129   : > { %1186 = vmatpush3.bf16.msra.mxu1 %v1183_v16 }
 0x12a   : > { %1188 = vmatprep.subr.bf16.mxu1 %v1187_v19 }
 0x12c   : > { %1086 = vmatmul.mubr.msk.f32.vlgmr.msra.gmra.mrb[0].mxu1 %vm230_vm1, %v526_v23 }
 0x12d   : > { %1190 = vmatpush3.bf16.msra.mxu1 %v1187_v19  ;;  %1104 = vmatprep.mubr.msk.f32.mxu1 %vm230_vm1, %v708_v26 }
 0x12e   : > { %1192 = vmatprep.subr.bf16.mxu1 %v1191_v22 }
 0x131   : > { %1194 = vmatpush3.bf16.msra.mxu1 %v1191_v22 }
 0x132   : > { %1196 = vmatprep.subr.bf16.mxu1 %v1195_v27 }
 0x135   : > { %1198 = vmatpush3.bf16.msra.mxu1 %v1195_v27 }
 0x136   : > { %1200 = vmatprep.subr.bf16.mxu1 %v1199_v30 }
 0x139   : > { %1202 = vmatpush3.bf16.msra.mxu1 %v1199_v30 }
 0x13c   : > { %1105 = vmatmul.mubr.msk.f32.vlgmr.msra.gmra.mrb[0].mxu1 %vm230_vm1, %v709_v31 }
 0x20f   : > { %v1106_v33 = vpop.f32.mrb[0].mxu1 }
 0x210   : > { %v810_v34 = vadd.f32 %v1106_v33, %v928_v32  ;;  %v791_v35 = vpop.f32.mrb[1].mxu1 }
 0x211   : > { %v809_v36 = vadd.f32 %v928_v32, %v791_v35 }
 0x212   : > { %v814_v37 = vadd.f32 %v810_v34, %v1301_v13 }
 0x213   : > { %v813_v38 = vadd.f32 %v809_v36, %v1299_v12 }
 0x214   : > { %v816_v39 = vmax.f32 %v814_v37, 0.0 }
 0x215   : > { %v815_v40 = vmax.f32 %v813_v38, 0.0 }
 0x216   : > { %818 = vst.msk [vmem:[%s224_s13 + $0x8] sm:$0xff] %vm230_vm1, %v816_v39 }
 0x217   : > { %817 = vst.msk [vmem:[%s224_s13] sm:$0xff] %vm230_vm1, %v815_v40 }
 0x218 PF: > { %s15_s18 = sadd.s32 1, %s1226_s18  }
 0x219   : > { %p12_p4 = scmp.ge.s32.totalorder %s15_s18, 4  }
 0x21b   :  { %14 = sbr.rel (!%p12_p4) target bundleno = 1 (0x1), region = 74 }

</bundles_post_ra>
